<compile_context>
chip_gen: v5e
topology: v5e:2x2
jax: 0.10.0
libtpu: 0.0.40
codegen_flags: <defaults>
</compile_context>

<pallas_src>
import functools
import math

import jax
import jax.numpy as jnp
from jax.experimental import pallas as pl
from jax.experimental.pallas import tpu as pltpu


def mha_mean_kernel(x_ref, wqkv_t_ref, bias_ref, wo_t_ref, out_ref):
    """Bp batch elements: fused QKV -> softmax attention -> mean -> out-proj."""
    Bp, S, E = x_ref.shape
    inv_s = 1.0 / S

    bias = bias_ref[...]                                     # (1, 4E): [qkv bias | out bias]

    # Fused QKV projection: one MXU matmul (M = Bp*S, N = 3E) + one bias add.
    x2 = x_ref[...].reshape(Bp * S, E)
    qkv = jnp.dot(x2, wqkv_t_ref[...],
                  preferred_element_type=jnp.float32) + bias[:, :3 * E]
    qkv = qkv.reshape(Bp, S, 3 * E)
    # Lane slices at offsets 0/E/2E; only exactly free when E % 128 == 0 — cheap at small E.
    q = qkv[:, :, :E]            # 1/sqrt(E) already folded into Wq / bq by the wrapper
    k = qkv[:, :, E:2 * E]
    v = qkv[:, :, 2 * E:]

    # Batched scores without materializing k^T (contract last dims on the MXU).
    s = jnp.einsum('bqd,bkd->bqk', q, k,
                   preferred_element_type=jnp.float32)       # (Bp, S, S)
    m = jnp.max(s, axis=-1, keepdims=True)
    p = jnp.exp(s - m)                                       # unnormalized probs
    l = jnp.sum(p, axis=-1, keepdims=True)                   # row sums
    r = pl.reciprocal(l, approx=False)                       # exact: keeps 1e-5 tolerance

    # mean over queries commutes with the linear combination over values:
    #   mean_q( softmax(s) @ v ) == ( (1/S) * sum_q p_qk / l_q ) @ v
    # (per-row reciprocal applied BEFORE the sum over q, so this is exact).
    w = jnp.sum(p * r, axis=1, keepdims=True) * inv_s        # (Bp, 1, S)
    abar = jnp.einsum('bqk,bkd->bqd', w, v,
                      preferred_element_type=jnp.float32)[:, 0, :]   # (Bp, E)

    # Out-projection is linear -> commutes with the mean: one (Bp,E)@(E,E).
    out_ref[...] = (jnp.dot(abar, wo_t_ref[...],
                            preferred_element_type=jnp.float32) + bias[:, 3 * E:])


def prepare_params(in_proj_weight, in_proj_bias, out_proj_weight, out_proj_bias):
    """Hoisted (call-once) weight prep.  PyTorch MultiheadAttention layout:
    in_proj_weight (3E, E), in_proj_bias (3E,), out_proj_weight (E, E),
    out_proj_bias (E,).  Folds the 1/sqrt(E) scale into the Q rows, fuses
    Q/K/V, pre-transposes, and packs both biases into one (1, 4E) operand."""
    E = out_proj_weight.shape[0]
    scale = 1.0 / math.sqrt(E)
    sc = jnp.concatenate([jnp.full((E,), scale, jnp.float32),
                          jnp.ones((2 * E,), jnp.float32)])
    w_qkv_t = (in_proj_weight.astype(jnp.float32) * sc[:, None]).T      # (E, 3E)
    bias = jnp.concatenate([in_proj_bias.astype(jnp.float32) * sc,
                            out_proj_bias.astype(jnp.float32)]).reshape(1, 4 * E)
    wo_t = out_proj_weight.astype(jnp.float32).T                        # (E, E)
    return w_qkv_t, bias, wo_t


def _num_tensorcores():
    """TensorCores per chip (2 on v7x, 1 on v5e/v6e); safe fallback = 1."""
    try:
        n = getattr(jax.devices()[0], "num_cores", 1)
        return int(n) if n else 1
    except Exception:
        return 1


@jax.jit
def forward_prepared(x, w_qkv_t, bias, wo_t):
    """x: (B, S, E) f32, prepared params from prepare_params(). Returns (B, E)."""
    B, S, E = x.shape

    # Adaptive grid: split only when there are multiple TensorCores AND each
    # step gets enough rows to amortize the ~0.35 us per-step overhead.
    n_tc = _num_tensorcores()
    G = 1
    if n_tc > 1 and B % n_tc == 0 and (B // n_tc) * S >= 256:
        G = n_tc
    Bp = B // G

    return pl.pallas_call(
        mha_mean_kernel,
        out_shape=jax.ShapeDtypeStruct((B, E), jnp.float32),
        grid_spec=pltpu.PrefetchScalarGridSpec(
            num_scalar_prefetch=0,
            grid=(G,),
            in_specs=[
                pl.BlockSpec((Bp, S, E), lambda g: (g, 0, 0)),    # x
                pl.BlockSpec((E, 3 * E), lambda g: (0, 0)),       # fused W_qkv^T (scaled)
                pl.BlockSpec((1, 4 * E), lambda g: (0, 0)),       # packed biases
                pl.BlockSpec((E, E), lambda g: (0, 0)),           # W_out^T
            ],
            out_specs=pl.BlockSpec((Bp, E), lambda g: (g, 0)),
        ),
        compiler_params=pltpu.CompilerParams(
            dimension_semantics=("parallel",)),
    )(x, w_qkv_t, bias, wo_t)


def multi_attention_forward(x, in_proj_weight, in_proj_bias, out_proj_weight,
                            out_proj_bias):
    """Convenience one-shot API (prep + kernel). Prefer prepare_params() +
    forward_prepared() when calling repeatedly."""
    return forward_prepared(x, *prepare_params(in_proj_weight, in_proj_bias,
                                               out_proj_weight, out_proj_bias))


def ref_forward(x, in_proj_weight, in_proj_bias, out_proj_weight, out_proj_bias):
    """Pure-JAX reference mirroring nn.MultiheadAttention(num_heads=1) + mean."""
    E = x.shape[-1]
    wq, wk, wv = in_proj_weight[:E], in_proj_weight[E:2 * E], in_proj_weight[2 * E:]
    bq, bk, bv = in_proj_bias[:E], in_proj_bias[E:2 * E], in_proj_bias[2 * E:]
    q = x @ wq.T + bq
    k = x @ wk.T + bk
    v = x @ wv.T + bv
    s = (q / math.sqrt(E)) @ jnp.swapaxes(k, 1, 2)
    p = jax.nn.softmax(s, axis=-1)
    o = (p @ v) @ out_proj_weight.T + out_proj_bias
    return jnp.mean(o, axis=1)


if __name__ == "__main__":
    B, S, E = 2, 8, 32

    key = jax.random.PRNGKey(0)
    kx, kin, kout, kb1, kb2 = jax.random.split(key, 5)

    x = jax.random.normal(kx, (B, S, E), dtype=jnp.float32)

    # Deterministic parameter init (xavier-uniform-like, PyTorch MHA layout).
    limit = math.sqrt(6.0 / (E + E))
    in_proj_weight = jax.random.uniform(kin, (3 * E, E), jnp.float32, -limit, limit)
    in_proj_bias = 0.01 * jax.random.normal(kb1, (3 * E,), dtype=jnp.float32)
    out_proj_weight = jax.random.uniform(kout, (E, E), jnp.float32, -limit, limit)
    out_proj_bias = 0.01 * jax.random.normal(kb2, (E,), dtype=jnp.float32)

    # Weight prep runs once; the kernel call itself is jitted.
    w_qkv_t, bias_packed, wo_t = prepare_params(in_proj_weight, in_proj_bias,
                                                out_proj_weight, out_proj_bias)
    out = forward_prepared(x, w_qkv_t, bias_packed, wo_t)
    out = jax.block_until_ready(out)

    expected = ref_forward(x, in_proj_weight, in_proj_bias,
                           out_proj_weight, out_proj_bias)
    assert out.shape == (B, E)
    assert jnp.allclose(out, expected, atol=1e-5, rtol=1e-5)

    print("KERNEL_OK")
</pallas_src>

<mosaic_0001>
module attributes {stable_mosaic.version = 11 : i64} {
  func.func @mha_mean_kernel(%arg0: i32, %arg1: memref<2x8x32xf32, #tpu.memory_space<vmem>>, %arg2: memref<32x96xf32, #tpu.memory_space<vmem>>, %arg3: memref<1x128xf32, #tpu.memory_space<vmem>>, %arg4: memref<32x32xf32, #tpu.memory_space<vmem>>, %arg5: memref<2x32xf32, #tpu.memory_space<vmem>>) attributes {dimension_semantics = [#tpu.dimension_semantics<parallel>], iteration_bounds = array<i64: 1>, scalar_prefetch = 0 : i64, scratch_operands = 0 : i64, tpu.core_type = #tpu.core_type<tc>, window_params = [{transform_indices = @transform_0, window_bounds = array<i64: 2, 8, 32>}, {pipeline_mode = #tpu.pipeline_mode<synchronous>, transform_indices = @transform_1, window_bounds = array<i64: 32, 96>}, {pipeline_mode = #tpu.pipeline_mode<synchronous>, transform_indices = @transform_2, window_bounds = array<i64: 1, 128>}, {pipeline_mode = #tpu.pipeline_mode<synchronous>, transform_indices = @transform_3, window_bounds = array<i64: 32, 32>}, {transform_indices = @transform_4, window_bounds = array<i64: 2, 32>}]} {
    %c0 = arith.constant 0 : index
    %c0_0 = arith.constant 0 : index
    %0 = vector.load %arg3[%c0, %c0_0] : memref<1x128xf32, #tpu.memory_space<vmem>>, vector<1x128xf32>
    %c0_1 = arith.constant 0 : index
    %c0_2 = arith.constant 0 : index
    %c0_3 = arith.constant 0 : index
    %1 = vector.load %arg1[%c0_1, %c0_2, %c0_3] : memref<2x8x32xf32, #tpu.memory_space<vmem>>, vector<2x8x32xf32>
    %2 = vector.shape_cast %1 : vector<2x8x32xf32> to vector<16x32xf32>
    %c0_4 = arith.constant 0 : index
    %c0_5 = arith.constant 0 : index
    %3 = vector.load %arg2[%c0_4, %c0_5] : memref<32x96xf32, #tpu.memory_space<vmem>>, vector<32x96xf32>
    %cst = arith.constant dense<0.000000e+00> : vector<16x96xf32>
    %4 = tpu.matmul %2, %3, %cst {dimension_numbers = #tpu.dot_dimension_numbers<[1], [0], [0], [1], [0, 0, 1, 1], [], []>} : vector<16x32xf32>, vector<32x96xf32>, vector<16x96xf32> -> vector<16x96xf32>
    %5 = vector.extract_strided_slice %0 {offsets = [0, 0], sizes = [1, 96], strides = [1, 1]} : vector<1x128xf32> to vector<1x96xf32>
    %6 = vector.broadcast %5 : vector<1x96xf32> to vector<16x96xf32>
    %7 = arith.addf %4, %6 : vector<16x96xf32>
    %8 = vector.shape_cast %7 : vector<16x96xf32> to vector<2x8x96xf32>
    %9 = vector.extract_strided_slice %8 {offsets = [0, 0, 0], sizes = [2, 8, 32], strides = [1, 1, 1]} : vector<2x8x96xf32> to vector<2x8x32xf32>
    %10 = vector.extract_strided_slice %8 {offsets = [0, 0, 32], sizes = [2, 8, 32], strides = [1, 1, 1]} : vector<2x8x96xf32> to vector<2x8x32xf32>
    %11 = vector.extract_strided_slice %8 {offsets = [0, 0, 64], sizes = [2, 8, 32], strides = [1, 1, 1]} : vector<2x8x96xf32> to vector<2x8x32xf32>
    "tpu.trace_start"() <{level = 10 : i32, message = "bqd,bkd->bqk"}> : () -> ()
    %cst_6 = arith.constant dense<0.000000e+00> : vector<2x8x8xf32>
    %12 = tpu.matmul %9, %10, %cst_6 {dimension_numbers = #tpu.dot_dimension_numbers<[2], [2], [1], [1], [0, 0, 0, 1, 1, 1], [0], [0]>} : vector<2x8x32xf32>, vector<2x8x32xf32>, vector<2x8x8xf32> -> vector<2x8x8xf32>
    "tpu.trace_stop"() : () -> ()
    %cst_7 = arith.constant dense<0xFF800000> : vector<2x8xf32>
    %13 = vector.multi_reduction <maximumf>, %12, %cst_7 [2] : vector<2x8x8xf32> to vector<2x8xf32>
    %14 = vector.shape_cast %13 : vector<2x8xf32> to vector<2x8x1xf32>
    %15 = vector.broadcast %14 : vector<2x8x1xf32> to vector<2x8x8xf32>
    %16 = arith.subf %12, %15 : vector<2x8x8xf32>
    %17 = math.exp %16 : vector<2x8x8xf32>
    %cst_8 = arith.constant dense<0.000000e+00> : vector<2x8xf32>
    %18 = vector.multi_reduction <add>, %17, %cst_8 [2] : vector<2x8x8xf32> to vector<2x8xf32>
    %19 = vector.shape_cast %18 : vector<2x8xf32> to vector<2x8x1xf32>
    %20 = tpu.reciprocal %19 : vector<2x8x1xf32> -> vector<2x8x1xf32>
    %21 = vector.broadcast %20 : vector<2x8x1xf32> to vector<2x8x8xf32>
    %22 = arith.mulf %17, %21 : vector<2x8x8xf32>
    %cst_9 = arith.constant dense<0.000000e+00> : vector<2x8xf32>
    %23 = vector.multi_reduction <add>, %22, %cst_9 [1] : vector<2x8x8xf32> to vector<2x8xf32>
    %24 = vector.shape_cast %23 : vector<2x8xf32> to vector<2x1x8xf32>
    %cst_10 = arith.constant 1.250000e-01 : f32
    %25 = vector.broadcast %cst_10 : f32 to vector<2x1x8xf32>
    %26 = arith.mulf %24, %25 : vector<2x1x8xf32>
    "tpu.trace_start"() <{level = 10 : i32, message = "bqk,bkd->bqd"}> : () -> ()
    %cst_11 = arith.constant dense<0.000000e+00> : vector<2x1x32xf32>
    %27 = tpu.matmul %26, %11, %cst_11 {dimension_numbers = #tpu.dot_dimension_numbers<[2], [1], [1], [2], [0, 0, 0, 1, 1, 2], [0], [0]>} : vector<2x1x8xf32>, vector<2x8x32xf32>, vector<2x1x32xf32> -> vector<2x1x32xf32>
    "tpu.trace_stop"() : () -> ()
    %28 = vector.shape_cast %27 : vector<2x1x32xf32> to vector<2x32xf32>
    %c0_12 = arith.constant 0 : index
    %c0_13 = arith.constant 0 : index
    %29 = vector.load %arg4[%c0_12, %c0_13] : memref<32x32xf32, #tpu.memory_space<vmem>>, vector<32x32xf32>
    %cst_14 = arith.constant dense<0.000000e+00> : vector<2x32xf32>
    %30 = tpu.matmul %28, %29, %cst_14 {dimension_numbers = #tpu.dot_dimension_numbers<[1], [0], [0], [1], [0, 0, 1, 1], [], []>} : vector<2x32xf32>, vector<32x32xf32>, vector<2x32xf32> -> vector<2x32xf32>
    %31 = vector.extract_strided_slice %0 {offsets = [0, 96], sizes = [1, 32], strides = [1, 1]} : vector<1x128xf32> to vector<1x32xf32>
    %32 = vector.broadcast %31 : vector<1x32xf32> to vector<2x32xf32>
    %33 = arith.addf %30, %32 : vector<2x32xf32>
    %c0_15 = arith.constant 0 : index
    %c0_16 = arith.constant 0 : index
    %34 = vector.load %arg5[%c0_15, %c0_16] : memref<2x32xf32, #tpu.memory_space<vmem>>, vector<2x32xf32>
    tpu.vector_store %arg5[%c0_15, %c0_16], %33 {strides = array<i32>} : memref<2x32xf32, #tpu.memory_space<vmem>>, vector<2x32xf32>,
    return
  }
  func.func @transform_0(%arg0: i32) -> (i32, i32, i32) {
    %c0_i32 = arith.constant 0 : i32
    %c0_i32_0 = arith.constant 0 : i32
    %c0_i32_1 = arith.constant 0 : i32
    return %arg0, %c0_i32, %c0_i32_0 : i32, i32, i32
  }
  func.func @transform_1(%arg0: i32) -> (i32, i32) {
    %c0_i32 = arith.constant 0 : i32
    %c0_i32_0 = arith.constant 0 : i32
    %c0_i32_1 = arith.constant 0 : i32
    return %c0_i32, %c0_i32_0 : i32, i32
  }
  func.func @transform_2(%arg0: i32) -> (i32, i32) {
    %c0_i32 = arith.constant 0 : i32
    %c0_i32_0 = arith.constant 0 : i32
    %c0_i32_1 = arith.constant 0 : i32
    return %c0_i32, %c0_i32_0 : i32, i32
  }
  func.func @transform_3(%arg0: i32) -> (i32, i32) {
    %c0_i32 = arith.constant 0 : i32
    %c0_i32_0 = arith.constant 0 : i32
    %c0_i32_1 = arith.constant 0 : i32
    return %c0_i32, %c0_i32_0 : i32, i32
  }
  func.func @transform_4(%arg0: i32) -> (i32, i32) {
    %c0_i32 = arith.constant 0 : i32
    %c0_i32_0 = arith.constant 0 : i32
    return %arg0, %c0_i32 : i32, i32
  }
}

</mosaic_0001>

<bundles_post_ra>
// kernel: forward_prepared.1
= control target key start
LH: loop header
LB: loop body
LE: loop exit
PB: predicated region body
PF: predicated region fallthrough
CT: control target
= control target key end

     0   :  { %9 = vsyncpa [#allocation3], 0  ;;  %s528_s0 = inlined_call_operand.hbm [shape: f32[2,8,32], index: 0, kind: input, shape index: {}]   ;;  %s529_s1 = inlined_call_operand.hbm [shape: f32[32,96], index: 1, kind: input, shape index: {}]   ;;  %s530_s2 = inlined_call_operand.vmem [shape: f32[1,128], index: 2, kind: input, shape index: {}]   ;;  %s531_s3 = inlined_call_operand.hbm [shape: f32[32,32], index: 3, kind: input, shape index: {}]   ;;  %s532_s4 = inlined_call_operand.hbm [shape: f32[2,32], index: 4, kind: output, shape index: {}]  }
   0x1   :  { %10 = vsyncpa [#allocation6], 0 }
   0x2   :  { %11 = vsyncpa [#allocation4], 0  ;;  %s29_s17 = sshll.u32 %s529_s1, 4  ;;  %s459_s18 = smov [#allocation5]   ;;  %s30_s17 = int_to_ptr.hbm [resolvable:$true] %s29_s17 }
   0x3   :  { %s31_s19 = sshll.u32 %s459_s18, 4  ;;  %s16_s22 = sshll.u32 %s528_s0, 4  ;;  %s32_s19 = int_to_ptr.vmem [resolvable:$true] %s31_s19  ;;  %s17_s22 = int_to_ptr.hbm [resolvable:$true] %s16_s22 }
   0x4   :  { %s460_s23 = smov 128   ;;  %s461_s24 = smov 8  }
   0x5   :  { %37 = dma.hbm_to_vmem [thread:$0]  %s30_s17, 512, %s32_s19, [#allocation6], %s460_s23, %s460_s23, %s461_s24  }
   0x6   :  { %s462_s25 = smov [#allocation2]   ;;  %s44_s29 = sshll.u32 %s531_s3, 4  ;;  %s45_s29 = int_to_ptr.hbm [resolvable:$true] %s44_s29 }
   0x7   :  { %s18_s26 = sshll.u32 %s462_s25, 4  ;;  %s463_s1 = smov [#allocation7]   ;;  %s19_s26 = int_to_ptr.vmem [resolvable:$true] %s18_s26 }
   0x8   :  { %24 = dma.hbm_to_vmem [thread:$0]  %s17_s22, 256, %s19_s26, [#allocation3], %s460_s23, %s460_s23, %s461_s24  }
   0x9   :  { %s46_s30 = sshll.u32 %s463_s1, 4  ;;  %s47_s30 = int_to_ptr.vmem [resolvable:$true] %s46_s30 }
   0xa   :  { %52 = dma.hbm_to_vmem [thread:$0]  %s45_s29, 512, %s47_s30, [#allocation6], %s460_s23, %s460_s23, %s461_s24  }
   0xb   :  { %453 = dma.done.wait [#allocation3], 256  }
   0xc   :  { %454 = vsyncadd [#allocation3], 4294967040 }
   0xd   :  { %455 = dma.done.wait [#allocation6], 1024  }
   0xe   :  { %456 = vsyncadd [#allocation6], 4294966272  ;;  %v71_v0 = vld [vmem:[#allocation5 + $0x18] sm:$0xff]  ;;  %v70_v1 = vld [vmem:[#allocation5 + $0x10] sm:$0xff]  ;;  %vm75_vm0 = vcmask 261120   ;;  %s464_s5 = smov 96  }
   0xf   :  { %94 = vmatpush.msra.mxu0 %v71_v0  ;;  %v69_v2 = vld [vmem:[#allocation5 + $0x8] sm:$0xff]  ;;  %v68_v3 = vld [vmem:[#allocation5] sm:$0xff]  ;;  %v66_v4 = vld [vmem:[#allocation2] sm:$0xff]  ;;  %s465_s6 = smov 64   ;;  %vm159_vm1 = vcmask 64512   ;;  %vm283_vm10 = vcmask 1041409  }
  0x10   :  { %v67_v5 = vld [vmem:[#allocation2 + $0x8] sm:$0xff]  ;;  %v507_v6 = vld [vmem:[%s530_s2] ss:$0 sm:$0xff]  ;;  %s466_s2 = smov 32   ;;  %s467_s7 = smov [#allocation8]   ;;  %vm310_vm11 = vcmask 254976  }
  0x11   :  { %95 = vmatpush.msra.mxu0 %v70_v1  ;;  %s317_s8 = sshll.u32 %s467_s7, 4  ;;  %s319_s11 = sshll.u32 %s532_s4, 4  ;;  %s318_s8 = int_to_ptr.vmem [resolvable:$true] %s317_s8  ;;  %s320_s11 = int_to_ptr.hbm [resolvable:$true] %s319_s11 }
  0x13   :  { %96 = vmatpush.msra.mxu0 %v69_v2 }
  0x15   :  { %97 = vmatpush.msra.mxu0 %v68_v3 }
  0x16   :  { %330 = vmatmul.msk.f32.vlgmr.msra.gmra.mxu0 %vm75_vm0, %v66_v4 }
  0x1e   :  { %331 = vmatmul.msk.f32.gmra.mxu0 %vm75_vm0, %v67_v5  ;;  %v279_v5 = vld [vmem:[#allocation7 + $0x18] sm:$0xff] }
  0x93   :  { %v99_v7 = vpop.f32.mrf.mxu0 }
  0x94   :  { %v100_v8 = vadd.f32 %v507_v6, %v99_v7  ;;  %v278_v7 = vld [vmem:[#allocation7 + $0x10] sm:$0xff] }
  0x96   :  { %106 = vrot.lane.b32.xlu0 %v100_v8, %s464_s5 }
  0x9b   :  { %v102_v9 = vpop.f32.mrf.mxu0 }
  0x9c   :  { %v103_v10 = vadd.f32 %v507_v6, %v102_v9  ;;  %v276_v9 = vld [vmem:[#allocation7] sm:$0xff] }
  0x9e   :  { %133 = vrot.lane.b32.xlu0 %v103_v10, %s464_s5 }
  0xa6   :  { %224 = vrot.lane.b32.xlu0 %v100_v8, %s465_s6 }
 0x108   :  { %v107_v11 = vpop.permute.xlu0 %106 }
 0x109   :  { %332 = vmatpush.xpose.msk.msra.mxu1 %vm75_vm0, %v107_v11 }
 0x10c   :  { %333 = vmatmul.msk.f32.vlgmr.msra.gmra.mxu1 %vm75_vm0, %v100_v8  ;;  %v277_v8 = vld [vmem:[#allocation7 + $0x8] sm:$0xff] }
 0x10d   :  { %302 = vmatpush.msrb.mxu1 %v279_v5 }
 0x10f   :  { %303 = vmatpush.msrb.mxu1 %v278_v7 }
 0x110   :  { %v134_v12 = vpop.permute.xlu0 %133 }
 0x111   :  { %334 = vmatpush.xpose.msk.msra.mxu2 %vm75_vm0, %v134_v12  ;;  %304 = vmatpush.msrb.mxu1 %v277_v8 }
 0x113   :  { %305 = vmatpush.msrb.mxu1 %v276_v9 }
 0x114   :  { %335 = vmatmul.msk.f32.vlgmr.msra.gmra.mxu2 %vm75_vm0, %v103_v10 }
 0x118   :  { %v225_v13 = vpop.permute.xlu0 %224 }
 0x119   :  { %245 = vmatpush.msra.mxu3 %v225_v13 }
 0x189   :  { %v129_v14 = vpop.f32.mrf.mxu1 }
 0x18a   :  { %v160_v15 = vsel %vm159_vm1, %v129_v14, -inf }
 0x18b   :  { %161 = vmax.xlane.f32.xlu1 %v160_v15 }
 0x197   :  { %v156_v16 = vpop.f32.mrf.mxu2 }
 0x198   :  { %v163_v17 = vsel %vm159_vm1, %v156_v16, -inf }
 0x199   :  { %164 = vmax.xlane.f32.xlu1 %v163_v17 }
 0x1b2   :  { %250 = vrot.lane.b32.xlu1 %v103_v10, %s465_s6 }
 0x1fe   :  { %v162_v18 = vpop.xlane.xlu1 %161 }
 0x1ff   :  { %v166_v19 = vsub.f32 %v129_v14, %v162_v18 }
 0x201   :  { %v168_v20 = vmul.f32 1.442695, %v166_v19 }
 0x203   :  { %349 = vpow2.f32 %v168_v20 }
 0x209   :  { %v350_v21 = vpop.eup %349 }
 0x20a   :  { %v172_v22 = vsel %vm159_vm1, %v350_v21, 0.0 }
 0x20b   :  { %173 = vadd.xlane.f32.xlu2 %v172_v22 }
 0x20c   :  { %v165_v23 = vpop.xlane.xlu1 %164 }
 0x20d   :  { %v167_v24 = vsub.f32 %v156_v16, %v165_v23 }
 0x20f   :  { %v170_v25 = vmul.f32 1.442695, %v167_v24 }
 0x211   :  { %351 = vpow2.f32 %v170_v25 }
 0x217   :  { %v352_v26 = vpop.eup %351 }
 0x218   :  { %v175_v27 = vsel %vm159_vm1, %v352_v26, 0.0 }
 0x219   :  { %176 = vadd.xlane.f32.xlu2 %v175_v27 }
 0x224   :  { %v251_v28 = vpop.permute.xlu1 %250 }
 0x225   :  { %271 = vmatpush.msrb.mxu3 %v251_v28 }
 0x231   :  { %285 = vrot.lane.b32.xlu2 %v507_v6, %s466_s2 }
 0x27e   :  { %v174_v29 = vpop.xlane.xlu2 %173 }
 0x27f   :  { %353 = vrcp.f32 %v174_v29  ;;  %v189_v33 = vand.u32 2147483648, %v174_v29  ;;  %v187_v35 = vand.u32 2147483647, %v174_v29  ;;  %vm183_vm3 = vweird.f32 %v174_v29 }
 0x281   :  { %v190_v38 = vor.u32 1.1754944e-38, %v189_v33  ;;  %vm188_vm5 = vcmp.eq.f32.partialorder %v187_v35, 8.507059e+37 }
 0x285   :  { %v354_v30 = vpop.eup %353 }
 0x286   :  { %v179_v31 = vmul.f32 %v354_v30, %v174_v29  ;;  %vm184_vm2 = vweird.f32 %v354_v30 }
 0x287   :  { %vm185_vm4 = vmor %vm183_vm3, %vm184_vm2 }
 0x288   :  { %v180_v32 = vsub.f32 1.0, %v179_v31 }
 0x28a   :  { %v181_v34 = vmul.f32 %v354_v30, %v180_v32 }
 0x28c   :  { %v182_v36 = vadd.f32 %v354_v30, %v181_v34  ;;  %v177_v37 = vpop.xlane.xlu2 %176 }
 0x28d   :  { %355 = vrcp.f32 %v177_v37  ;;  %v203_v48 = vand.u32 2147483648, %v177_v37  ;;  %v201_v51 = vand.u32 2147483647, %v177_v37  ;;  %vm197_vm7 = vweird.f32 %v177_v37 }
 0x28e   :  { %v186_v39 = vsel %vm185_vm4, %v354_v30, %v182_v36 }
 0x28f   :  { %v191_v40 = vsel %vm188_vm5, %v190_v38, %v186_v39  ;;  %v204_v54 = vor.u32 1.1754944e-38, %v203_v48  ;;  %vm202_vm9 = vcmp.eq.f32.partialorder %v201_v51, 8.507059e+37 }
 0x290   :  { %v206_v41 = vmul.f32 %v350_v21, %v191_v40 }
 0x292   :  { %v208_v42 = vsel %vm159_vm1, %v206_v41, 0.0 }
 0x293   :  { %v356_v43 = vpop.eup %355  ;;  %v209_v44 = vrot.slane %v208_v42, 4 }
 0x294   :  { %v193_v45 = vmul.f32 %v356_v43, %v177_v37  ;;  %vm198_vm6 = vweird.f32 %v356_v43  ;;  %v286_v14 = vpop.permute.xlu2 %285 }
 0x295   :  { %v210_v46 = vadd.f32 %v209_v44, %v208_v42  ;;  %vm199_vm8 = vmor %vm197_vm7, %vm198_vm6 }
 0x296   :  { %v194_v47 = vsub.f32 1.0, %v193_v45 }
 0x297   :  { %v211_v49 = vrot.slane %v210_v46, 2 }
 0x298   :  { %v195_v50 = vmul.f32 %v356_v43, %v194_v47 }
 0x299   :  { %v212_v52 = vadd.f32 %v211_v49, %v210_v46 }
 0x29a   :  { %v196_v53 = vadd.f32 %v356_v43, %v195_v50 }
 0x29b   :  { %v213_v55 = vrot.slane %v212_v52, 1 }
 0x29c   :  { %v200_v56 = vsel %vm199_vm8, %v356_v43, %v196_v53 }
 0x29d   :  { %v205_v57 = vsel %vm202_vm9, %v204_v54, %v200_v56  ;;  %v214_v58 = vadd.f32 %v213_v55, %v212_v52 }
 0x29e   :  { %v207_v59 = vmul.f32 %v352_v26, %v205_v57 }
 0x29f   :  { %v222_v60 = vmul.f32 0.125, %v214_v58 }
 0x2a0   :  { %v215_v61 = vsel %vm159_vm1, %v207_v59, 0.0 }
 0x2a1   :  { %336 = vmatmul.msk.f32.vlgmr.msra.gmra.mxu3 %vm159_vm1, %v222_v60  ;;  %v216_v62 = vrot.slane %v215_v61, 4 }
 0x2a3   :  { %v217_v63 = vadd.f32 %v216_v62, %v215_v61 }
 0x2a5   :  { %v218_v0 = vrot.slane %v217_v63, 2 }
 0x2a7   :  { %v219_v1 = vadd.f32 %v218_v0, %v217_v63 }
 0x2a9   :  { %v220_v2 = vrot.slane %v219_v1, 1 }
 0x2ab   :  { %v221_v3 = vadd.f32 %v220_v2, %v219_v1 }
 0x2ad   :  { %v223_v4 = vmul.f32 0.125, %v221_v3 }
 0x2af   :  { %337 = vmatmul.msk.f32.vlgmr.msrb.gmra.mxu3 %vm159_vm1, %v223_v4 }
 0x324   :  { %v247_v10 = vpop.f32.mrf.mxu3 }
 0x332   :  { %v273_v11 = vpop.f32.mrf.mxu3 }
 0x333   :  { %v282_v12 = vrot.slane %v273_v11, 7 }
 0x335   :  { %v284_v13 = vsel %vm283_vm10, %v282_v12, %v247_v10 }
 0x336   :  { %338 = vmatmul.msk.f32.vlgmr.msrb.gmra.mxu1 %vm75_vm0, %v284_v13 }
 0x3b3   :  { %v307_v6 = vpop.f32.mrf.mxu1 }
 0x3b4   :  { %v308_v15 = vadd.f32 %v307_v6, %v286_v14 }
 0x3b6   :  { %311 = vst.msk [vmem:[#allocation8] sm:$0x3] %vm310_vm11, %v308_v15 }
 0x3b7   :  { %322 = dma.vmem_to_hbm [thread:$0]  %s318_s8, 32, %s320_s11, [#allocation4]  }
 0x3b8   :  { %457 = dma.done.wait [#allocation4], 32  }
 0x3b9   :  { %458 = vsyncadd [#allocation4], 4294967264 }
 0x3ba   :  { %327 = vsyncpa [#allocation3], 1 }
 0x3bb   :  { %328 = vsyncpa [#allocation6], 1 }
 0x3bc   :  { %329 = vsyncpa [#allocation4], 1 }

</bundles_post_ra>
